<compile_context>
chip_gen: v7x
topology: tpu7x:2x2x1
jax: 0.10.0
libtpu: 0.0.40
codegen_flags: <defaults>
</compile_context>

<pallas_src>
import functools

import jax
import jax.numpy as jnp
from jax.experimental import pallas as pl
from jax.experimental.pallas import tpu as pltpu


def _segment_kernel(x_ref, w1_ref, b1_ref, w2_ref, b2_ref, w3_ref, b3_ref,
                    w4_ref, b4_ref, g_ref, beta_ref, o_ref, *, TH, Q):
    # TODO(synk): nn.Dropout layers are identity here (eval/inference mode); training-mode
    # stochastic masking is not implemented.
    L = 4 * TH * Q
    half = L // 2       # 2*TH*Q
    quart = L // 4      # TH*Q
    C4 = o_ref.shape[0]

    def conv1x1(w_ref, b_ref, y):
        # 1x1 conv == (C_out, C_in) @ (C_in, N) matmul + bias broadcast over lanes.
        return jnp.dot(w_ref[...], y, preferred_element_type=jnp.float32) + b_ref[...]

    x = x_ref[...]                                                # (C_in, 4*TH*Q)

    # conv1 on all four residue slabs in a single matmul.
    y = conv1x1(w1_ref, b1_ref, x)                                # (C1, 4*TH*Q)

    # pool0: MaxPool2d((1,2),(1,2)) along W, then ReLU.  Lane slabs are ordered
    # [r=0 | r=2 | r=1 | r=3], so one whole-half max yields [even pooled | odd pooled].
    p = jnp.maximum(jnp.maximum(y[:, :half], y[:, half:]), 0.0)   # (C1, 2*TH*Q)

    # conv2 + ReLU, one matmul across both pooled halves.
    z = jnp.maximum(conv1x1(w2_ref, b2_ref, p), 0.0)              # (C2, 2*TH*Q)

    # pool3 (AvgPool (1,2)/(1,2)) commuted ahead of conv3 (conv3 is affine).
    u = (z[:, :quart] + z[:, quart:]) * 0.5                       # (C2, TH*Q)

    # conv3, then ReLU (original order: conv3 -> pool3 -> ReLU).
    v = jnp.maximum(conv1x1(w3_ref, b3_ref, u), 0.0)              # (C3, TH*Q)

    # conv4 + ReLU.
    h = jnp.maximum(conv1x1(w4_ref, b4_ref, v), 0.0)              # (C4, TH*Q)

    # LayerNorm over the last Q positions per row t (eps=1e-5, biased variance).
    # gamma/beta broadcast hoisted out of the loop; one-pass variance; ONE lane-dense store.
    gb = jnp.broadcast_to(g_ref[...], (C4, Q))
    bb = jnp.broadcast_to(beta_ref[...], (C4, Q))
    rows = []
    for t in range(TH):   # TH is kept small by the wrapper; static unroll is fine.
        row = h[:, t * Q:(t + 1) * Q]                             # (C4, Q), lane-aligned
        mean = jnp.mean(row, axis=-1, keepdims=True)
        ex2 = jnp.mean(row * row, axis=-1, keepdims=True)
        var = jnp.maximum(ex2 - mean * mean, 0.0)
        nrm = (row - mean) * jax.lax.rsqrt(var + 1e-5)
        rows.append(nrm * gb + bb)
    o_ref[...] = jnp.concatenate(rows, axis=-1).astype(o_ref.dtype)


def _choose_tile_rows(B, H, C_in, C1, C2, C3, C4, Q,
                      budget_bytes=2 * 1024 * 1024, min_steps=4):
    """Rows per grid step: bounded per-step VMEM, >= min_steps grid steps, divides H."""
    per_row = 4 * (2 * C_in * 4 * Q     # x block (double-buffered)
                   + C1 * 4 * Q         # y
                   + C1 * 2 * Q         # p
                   + C2 * 2 * Q         # z
                   + C2 * Q + C3 * Q    # u, v
                   + 3 * C4 * Q)        # h / LN rows / output
    th = max(1, min(H, budget_bytes // max(per_row, 1)))
    while th > 1 and B * ((H + th - 1) // th) < min_steps:
        th = max(1, th // 2)
    while H % th:
        th -= 1
    return th


def segment_embeddings(x, params, tile_rows=None):
    """x: (B, n_channel, H, W=d_model) NCHW float32. Returns (B, n_channel, H, d_model//4)."""
    w1, b1, w2, b2, w3, b3, w4, b4, gamma, beta = params
    B, C_in, H, W = x.shape
    assert W % 4 == 0, "d_model must be divisible by 4 (two (1,2) pools)"
    Q = W // 4
    assert Q % 128 == 0, "d_model // 4 must be a multiple of 128 for lane-aligned slabs"
    C1, C2, C3, C4 = w1.shape[0], w2.shape[0], w3.shape[0], w4.shape[0]

    TH = tile_rows if tile_rows is not None else _choose_tile_rows(
        B, H, C_in, C1, C2, C3, C4, Q)
    assert H % TH == 0, (H, TH)
    nH = H // TH
    L = 4 * TH * Q

    # Residue-slab permute: w = 4*q + r, slabs ordered [r=0 | r=2 | r=1 | r=3] per TH-row
    # step block; within a slab lanes run t*Q + q.  (One extra HBM pass over x; see header.)
    xr = x.reshape(B, C_in, nH, TH, Q, 4)
    xr = jnp.take(xr, jnp.array([0, 2, 1, 3]), axis=-1)
    xr = xr.transpose(0, 2, 1, 5, 3, 4).reshape(B, nH, C_in, L)

    b1r, b2r, b3r, b4r = (b.reshape(-1, 1) for b in (b1, b2, b3, b4))
    g2 = gamma.reshape(1, Q)
    beta2 = beta.reshape(1, Q)

    def full_spec(a):
        nd = a.ndim
        return pl.BlockSpec(a.shape, lambda b, i: (0,) * nd)

    kernel = functools.partial(_segment_kernel, TH=TH, Q=Q)

    flops = 2 * B * H * (C1 * C_in * W + C2 * C1 * (W // 2)
                         + C3 * C2 * (W // 4) + C4 * C3 * (W // 4))
    bytes_accessed = 4 * (int(x.size) + B * C4 * H * Q
                          + sum(int(p.size) for p in params))
    cost = pl.CostEstimate(flops=int(flops),
                           transcendentals=int(B * H * C4),
                           bytes_accessed=int(bytes_accessed))

    out = pl.pallas_call(
        kernel,
        out_shape=jax.ShapeDtypeStruct((B, C4, H * Q), x.dtype),   # lane-dense output
        grid=(B, nH),
        in_specs=[
            pl.BlockSpec((pl.Squeezed(), pl.Squeezed(), C_in, L),
                         lambda b, i: (b, i, 0, 0)),
            full_spec(w1), full_spec(b1r),
            full_spec(w2), full_spec(b2r),
            full_spec(w3), full_spec(b3r),
            full_spec(w4), full_spec(b4r),
            full_spec(g2), full_spec(beta2),
        ],
        out_specs=pl.BlockSpec((pl.Squeezed(), C4, TH * Q),
                               lambda b, i: (b, 0, i)),
        compiler_params=pltpu.CompilerParams(
            dimension_semantics=("parallel", "parallel"),
            vmem_limit_bytes=32 * 1024 * 1024),
        cost_estimate=cost,
    )(xr, w1, b1r, w2, b2r, w3, b3r, w4, b4r, g2, beta2)

    # Free contiguous reshape (h-major layout matches the block tiling).
    return out.reshape(B, C4, H, Q)


def init_params(key, n_channel, n_hidden, d_model):
    """Deterministic synthetic parameters matching the module's shapes."""
    ks = jax.random.split(key, 8)

    def conv_wb(kw, kb, c_out, c_in):
        scale = 1.0 / jnp.sqrt(jnp.float32(c_in))
        w = jax.random.uniform(kw, (c_out, c_in), jnp.float32, -scale, scale)
        b = jax.random.uniform(kb, (c_out,), jnp.float32, -scale, scale)
        return w, b

    w1, b1 = conv_wb(ks[0], ks[1], n_hidden // 2, n_channel)
    w2, b2 = conv_wb(ks[2], ks[3], n_hidden, n_hidden // 2)
    w3, b3 = conv_wb(ks[4], ks[5], n_hidden // 2, n_hidden)
    w4, b4 = conv_wb(ks[6], ks[7], n_channel, n_hidden // 2)
    gamma = jnp.ones((d_model // 4,), jnp.float32)
    beta = jnp.zeros((d_model // 4,), jnp.float32)
    return (w1, b1, w2, b2, w3, b3, w4, b4, gamma, beta)


def reference(x, params):
    """Pure-JAX reference of the PyTorch forward (dropout in eval mode)."""
    w1, b1, w2, b2, w3, b3, w4, b4, gamma, beta = params
    hi = jax.lax.Precision.HIGHEST

    def conv1x1(y, w, b):
        return jnp.einsum('bchw,oc->bohw', y, w, precision=hi) + b[None, :, None, None]

    y = conv1x1(x, w1, b1)
    y = jnp.maximum(y[..., 0::2], y[..., 1::2])            # MaxPool (1,2)/(1,2)
    y = jax.nn.relu(y)
    y = jax.nn.relu(conv1x1(y, w2, b2))
    y = conv1x1(y, w3, b3)
    y = (y[..., 0::2] + y[..., 1::2]) * 0.5                # AvgPool (1,2)/(1,2)
    y = jax.nn.relu(y)
    y = jax.nn.relu(conv1x1(y, w4, b4))
    mean = y.mean(-1, keepdims=True)
    var = ((y - mean) ** 2).mean(-1, keepdims=True)
    y = (y - mean) / jnp.sqrt(var + 1e-5)
    return y * gamma + beta


if __name__ == "__main__":
    # Small shapes consistent with the module: W == d_model, multiple of 4, and d_model//4 a
    # multiple of 128 (lane alignment); LayerNorm is over d_model // 4.
    B, n_channel, H, n_hidden, d_model = 2, 4, 8, 32, 512

    key = jax.random.PRNGKey(0)
    k_x, k_p = jax.random.split(key)
    x = jax.random.normal(k_x, (B, n_channel, H, d_model), jnp.float32)
    params = init_params(k_p, n_channel, n_hidden, d_model)

    out = jax.block_until_ready(segment_embeddings(x, params))
    ref = jax.block_until_ready(reference(x, params))

    assert out.shape == (B, n_channel, H, d_model // 4), out.shape
    max_err = float(jnp.max(jnp.abs(out - ref)))
    assert jnp.allclose(out, ref, rtol=1e-3, atol=1e-3), max_err

    print("KERNEL_OK")
</pallas_src>

<mosaic_0001>
module attributes {stable_mosaic.version = 11 : i64} {
  func.func @_segment_kernel(%arg0: i32, %arg1: i32, %arg2: memref<1x1x4x2048xf32, #tpu.memory_space<vmem>>, %arg3: memref<16x4xf32, #tpu.memory_space<vmem>>, %arg4: memref<16x1xf32, #tpu.memory_space<vmem>>, %arg5: memref<32x16xf32, #tpu.memory_space<vmem>>, %arg6: memref<32x1xf32, #tpu.memory_space<vmem>>, %arg7: memref<16x32xf32, #tpu.memory_space<vmem>>, %arg8: memref<16x1xf32, #tpu.memory_space<vmem>>, %arg9: memref<4x16xf32, #tpu.memory_space<vmem>>, %arg10: memref<4x1xf32, #tpu.memory_space<vmem>>, %arg11: memref<1x128xf32, #tpu.memory_space<vmem>>, %arg12: memref<1x128xf32, #tpu.memory_space<vmem>>, %arg13: memref<1x4x512xf32, #tpu.memory_space<vmem>>) attributes {dimension_semantics = [#tpu.dimension_semantics<parallel>, #tpu.dimension_semantics<parallel>], iteration_bounds = array<i64: 2, 2>, scalar_prefetch = 0 : i64, scratch_operands = 0 : i64, tpu.core_type = #tpu.core_type<tc>, window_params = [{transform_indices = @transform_0, window_bounds = array<i64: 1, 1, 4, 2048>}, {pipeline_mode = #tpu.pipeline_mode<synchronous>, transform_indices = @transform_1, window_bounds = array<i64: 16, 4>}, {pipeline_mode = #tpu.pipeline_mode<synchronous>, transform_indices = @transform_2, window_bounds = array<i64: 16, 1>}, {pipeline_mode = #tpu.pipeline_mode<synchronous>, transform_indices = @transform_3, window_bounds = array<i64: 32, 16>}, {pipeline_mode = #tpu.pipeline_mode<synchronous>, transform_indices = @transform_4, window_bounds = array<i64: 32, 1>}, {pipeline_mode = #tpu.pipeline_mode<synchronous>, transform_indices = @transform_5, window_bounds = array<i64: 16, 32>}, {pipeline_mode = #tpu.pipeline_mode<synchronous>, transform_indices = @transform_6, window_bounds = array<i64: 16, 1>}, {pipeline_mode = #tpu.pipeline_mode<synchronous>, transform_indices = @transform_7, window_bounds = array<i64: 4, 16>}, {pipeline_mode = #tpu.pipeline_mode<synchronous>, transform_indices = @transform_8, window_bounds = array<i64: 4, 1>}, {pipeline_mode = #tpu.pipeline_mode<synchronous>, transform_indices = @transform_9, window_bounds = array<i64: 1, 128>}, {pipeline_mode = #tpu.pipeline_mode<synchronous>, transform_indices = @transform_10, window_bounds = array<i64: 1, 128>}, {transform_indices = @transform_11, window_bounds = array<i64: 1, 4, 512>}]} {
    %c0 = arith.constant 0 : index
    %c0_0 = arith.constant 0 : index
    %c0_1 = arith.constant 0 : index
    %c0_2 = arith.constant 0 : index
    %0 = vector.load %arg2[%c0, %c0_0, %c0_1, %c0_2] : memref<1x1x4x2048xf32, #tpu.memory_space<vmem>>, vector<1x1x4x2048xf32>
    %1 = vector.shape_cast %0 : vector<1x1x4x2048xf32> to vector<4x2048xf32>
    %c0_3 = arith.constant 0 : index
    %c0_4 = arith.constant 0 : index
    %2 = vector.load %arg3[%c0_3, %c0_4] : memref<16x4xf32, #tpu.memory_space<vmem>>, vector<16x4xf32>
    %cst = arith.constant dense<0.000000e+00> : vector<16x2048xf32>
    %3 = tpu.matmul %2, %1, %cst {dimension_numbers = #tpu.dot_dimension_numbers<[1], [0], [0], [1], [0, 0, 1, 1], [], []>} : vector<16x4xf32>, vector<4x2048xf32>, vector<16x2048xf32> -> vector<16x2048xf32>
    %c0_5 = arith.constant 0 : index
    %c0_6 = arith.constant 0 : index
    %4 = vector.load %arg4[%c0_5, %c0_6] : memref<16x1xf32, #tpu.memory_space<vmem>>, vector<16x1xf32>
    %5 = vector.broadcast %4 : vector<16x1xf32> to vector<16x2048xf32>
    %6 = arith.addf %3, %5 : vector<16x2048xf32>
    %7 = vector.extract_strided_slice %6 {offsets = [0, 0], sizes = [16, 1024], strides = [1, 1]} : vector<16x2048xf32> to vector<16x1024xf32>
    %8 = vector.extract_strided_slice %6 {offsets = [0, 1024], sizes = [16, 1024], strides = [1, 1]} : vector<16x2048xf32> to vector<16x1024xf32>
    %9 = arith.maximumf %7, %8 : vector<16x1024xf32>
    %cst_7 = arith.constant 0.000000e+00 : f32
    %10 = vector.broadcast %cst_7 : f32 to vector<16x1024xf32>
    %11 = arith.maximumf %9, %10 : vector<16x1024xf32>
    %c0_8 = arith.constant 0 : index
    %c0_9 = arith.constant 0 : index
    %12 = vector.load %arg5[%c0_8, %c0_9] : memref<32x16xf32, #tpu.memory_space<vmem>>, vector<32x16xf32>
    %cst_10 = arith.constant dense<0.000000e+00> : vector<32x1024xf32>
    %13 = tpu.matmul %12, %11, %cst_10 {dimension_numbers = #tpu.dot_dimension_numbers<[1], [0], [0], [1], [0, 0, 1, 1], [], []>} : vector<32x16xf32>, vector<16x1024xf32>, vector<32x1024xf32> -> vector<32x1024xf32>
    %c0_11 = arith.constant 0 : index
    %c0_12 = arith.constant 0 : index
    %14 = vector.load %arg6[%c0_11, %c0_12] : memref<32x1xf32, #tpu.memory_space<vmem>>, vector<32x1xf32>
    %15 = vector.broadcast %14 : vector<32x1xf32> to vector<32x1024xf32>
    %16 = arith.addf %13, %15 : vector<32x1024xf32>
    %cst_13 = arith.constant 0.000000e+00 : f32
    %17 = vector.broadcast %cst_13 : f32 to vector<32x1024xf32>
    %18 = arith.maximumf %16, %17 : vector<32x1024xf32>
    %19 = vector.extract_strided_slice %18 {offsets = [0, 0], sizes = [32, 512], strides = [1, 1]} : vector<32x1024xf32> to vector<32x512xf32>
    %20 = vector.extract_strided_slice %18 {offsets = [0, 512], sizes = [32, 512], strides = [1, 1]} : vector<32x1024xf32> to vector<32x512xf32>
    %21 = arith.addf %19, %20 : vector<32x512xf32>
    %cst_14 = arith.constant 5.000000e-01 : f32
    %22 = vector.broadcast %cst_14 : f32 to vector<32x512xf32>
    %23 = arith.mulf %21, %22 : vector<32x512xf32>
    %c0_15 = arith.constant 0 : index
    %c0_16 = arith.constant 0 : index
    %24 = vector.load %arg7[%c0_15, %c0_16] : memref<16x32xf32, #tpu.memory_space<vmem>>, vector<16x32xf32>
    %cst_17 = arith.constant dense<0.000000e+00> : vector<16x512xf32>
    %25 = tpu.matmul %24, %23, %cst_17 {dimension_numbers = #tpu.dot_dimension_numbers<[1], [0], [0], [1], [0, 0, 1, 1], [], []>} : vector<16x32xf32>, vector<32x512xf32>, vector<16x512xf32> -> vector<16x512xf32>
    %c0_18 = arith.constant 0 : index
    %c0_19 = arith.constant 0 : index
    %26 = vector.load %arg8[%c0_18, %c0_19] : memref<16x1xf32, #tpu.memory_space<vmem>>, vector<16x1xf32>
    %27 = vector.broadcast %26 : vector<16x1xf32> to vector<16x512xf32>
    %28 = arith.addf %25, %27 : vector<16x512xf32>
    %cst_20 = arith.constant 0.000000e+00 : f32
    %29 = vector.broadcast %cst_20 : f32 to vector<16x512xf32>
    %30 = arith.maximumf %28, %29 : vector<16x512xf32>
    %c0_21 = arith.constant 0 : index
    %c0_22 = arith.constant 0 : index
    %31 = vector.load %arg9[%c0_21, %c0_22] : memref<4x16xf32, #tpu.memory_space<vmem>>, vector<4x16xf32>
    %cst_23 = arith.constant dense<0.000000e+00> : vector<4x512xf32>
    %32 = tpu.matmul %31, %30, %cst_23 {dimension_numbers = #tpu.dot_dimension_numbers<[1], [0], [0], [1], [0, 0, 1, 1], [], []>} : vector<4x16xf32>, vector<16x512xf32>, vector<4x512xf32> -> vector<4x512xf32>
    %c0_24 = arith.constant 0 : index
    %c0_25 = arith.constant 0 : index
    %33 = vector.load %arg10[%c0_24, %c0_25] : memref<4x1xf32, #tpu.memory_space<vmem>>, vector<4x1xf32>
    %34 = vector.broadcast %33 : vector<4x1xf32> to vector<4x512xf32>
    %35 = arith.addf %32, %34 : vector<4x512xf32>
    %cst_26 = arith.constant 0.000000e+00 : f32
    %36 = vector.broadcast %cst_26 : f32 to vector<4x512xf32>
    %37 = arith.maximumf %35, %36 : vector<4x512xf32>
    %c0_27 = arith.constant 0 : index
    %c0_28 = arith.constant 0 : index
    %38 = vector.load %arg11[%c0_27, %c0_28] : memref<1x128xf32, #tpu.memory_space<vmem>>, vector<1x128xf32>
    %39 = vector.shape_cast %38 : vector<1x128xf32> to vector<1x128xf32>
    %40 = vector.broadcast %39 : vector<1x128xf32> to vector<4x128xf32>
    %c0_29 = arith.constant 0 : index
    %c0_30 = arith.constant 0 : index
    %41 = vector.load %arg12[%c0_29, %c0_30] : memref<1x128xf32, #tpu.memory_space<vmem>>, vector<1x128xf32>
    %42 = vector.shape_cast %41 : vector<1x128xf32> to vector<1x128xf32>
    %43 = vector.broadcast %42 : vector<1x128xf32> to vector<4x128xf32>
    %44 = vector.extract_strided_slice %37 {offsets = [0, 0], sizes = [4, 128], strides = [1, 1]} : vector<4x512xf32> to vector<4x128xf32>
    %cst_31 = arith.constant dense<0.000000e+00> : vector<4xf32>
    %45 = vector.multi_reduction <add>, %44, %cst_31 [1] : vector<4x128xf32> to vector<4xf32>
    %46 = vector.shape_cast %45 : vector<4xf32> to vector<4x1xf32>
    %cst_32 = arith.constant 1.280000e+02 : f32
    %47 = vector.broadcast %cst_32 : f32 to vector<4x1xf32>
    %48 = arith.divf %46, %47 : vector<4x1xf32>
    %49 = arith.mulf %44, %44 : vector<4x128xf32>
    %cst_33 = arith.constant dense<0.000000e+00> : vector<4xf32>
    %50 = vector.multi_reduction <add>, %49, %cst_33 [1] : vector<4x128xf32> to vector<4xf32>
    %51 = vector.shape_cast %50 : vector<4xf32> to vector<4x1xf32>
    %cst_34 = arith.constant 1.280000e+02 : f32
    %52 = vector.broadcast %cst_34 : f32 to vector<4x1xf32>
    %53 = arith.divf %51, %52 : vector<4x1xf32>
    %54 = arith.mulf %48, %48 : vector<4x1xf32>
    %55 = arith.subf %53, %54 : vector<4x1xf32>
    %cst_35 = arith.constant 0.000000e+00 : f32
    %56 = vector.broadcast %cst_35 : f32 to vector<4x1xf32>
    %57 = arith.maximumf %55, %56 : vector<4x1xf32>
    %58 = vector.broadcast %48 : vector<4x1xf32> to vector<4x128xf32>
    %59 = arith.subf %44, %58 : vector<4x128xf32>
    %cst_36 = arith.constant 9.99999974E-6 : f32
    %60 = vector.broadcast %cst_36 : f32 to vector<4x1xf32>
    %61 = arith.addf %57, %60 : vector<4x1xf32>
    %62 = math.rsqrt %61 : vector<4x1xf32>
    %63 = vector.broadcast %62 : vector<4x1xf32> to vector<4x128xf32>
    %64 = arith.mulf %59, %63 : vector<4x128xf32>
    %65 = arith.mulf %64, %40 : vector<4x128xf32>
    %66 = arith.addf %65, %43 : vector<4x128xf32>
    %67 = vector.extract_strided_slice %37 {offsets = [0, 128], sizes = [4, 128], strides = [1, 1]} : vector<4x512xf32> to vector<4x128xf32>
    %cst_37 = arith.constant dense<0.000000e+00> : vector<4xf32>
    %68 = vector.multi_reduction <add>, %67, %cst_37 [1] : vector<4x128xf32> to vector<4xf32>
    %69 = vector.shape_cast %68 : vector<4xf32> to vector<4x1xf32>
    %cst_38 = arith.constant 1.280000e+02 : f32
    %70 = vector.broadcast %cst_38 : f32 to vector<4x1xf32>
    %71 = arith.divf %69, %70 : vector<4x1xf32>
    %72 = arith.mulf %67, %67 : vector<4x128xf32>
    %cst_39 = arith.constant dense<0.000000e+00> : vector<4xf32>
    %73 = vector.multi_reduction <add>, %72, %cst_39 [1] : vector<4x128xf32> to vector<4xf32>
    %74 = vector.shape_cast %73 : vector<4xf32> to vector<4x1xf32>
    %cst_40 = arith.constant 1.280000e+02 : f32
    %75 = vector.broadcast %cst_40 : f32 to vector<4x1xf32>
    %76 = arith.divf %74, %75 : vector<4x1xf32>
    %77 = arith.mulf %71, %71 : vector<4x1xf32>
    %78 = arith.subf %76, %77 : vector<4x1xf32>
    %cst_41 = arith.constant 0.000000e+00 : f32
    %79 = vector.broadcast %cst_41 : f32 to vector<4x1xf32>
    %80 = arith.maximumf %78, %79 : vector<4x1xf32>
    %81 = vector.broadcast %71 : vector<4x1xf32> to vector<4x128xf32>
    %82 = arith.subf %67, %81 : vector<4x128xf32>
    %cst_42 = arith.constant 9.99999974E-6 : f32
    %83 = vector.broadcast %cst_42 : f32 to vector<4x1xf32>
    %84 = arith.addf %80, %83 : vector<4x1xf32>
    %85 = math.rsqrt %84 : vector<4x1xf32>
    %86 = vector.broadcast %85 : vector<4x1xf32> to vector<4x128xf32>
    %87 = arith.mulf %82, %86 : vector<4x128xf32>
    %88 = arith.mulf %87, %40 : vector<4x128xf32>
    %89 = arith.addf %88, %43 : vector<4x128xf32>
    %90 = vector.extract_strided_slice %37 {offsets = [0, 256], sizes = [4, 128], strides = [1, 1]} : vector<4x512xf32> to vector<4x128xf32>
    %cst_43 = arith.constant dense<0.000000e+00> : vector<4xf32>
    %91 = vector.multi_reduction <add>, %90, %cst_43 [1] : vector<4x128xf32> to vector<4xf32>
    %92 = vector.shape_cast %91 : vector<4xf32> to vector<4x1xf32>
    %cst_44 = arith.constant 1.280000e+02 : f32
    %93 = vector.broadcast %cst_44 : f32 to vector<4x1xf32>
    %94 = arith.divf %92, %93 : vector<4x1xf32>
    %95 = arith.mulf %90, %90 : vector<4x128xf32>
    %cst_45 = arith.constant dense<0.000000e+00> : vector<4xf32>
    %96 = vector.multi_reduction <add>, %95, %cst_45 [1] : vector<4x128xf32> to vector<4xf32>
    %97 = vector.shape_cast %96 : vector<4xf32> to vector<4x1xf32>
    %cst_46 = arith.constant 1.280000e+02 : f32
    %98 = vector.broadcast %cst_46 : f32 to vector<4x1xf32>
    %99 = arith.divf %97, %98 : vector<4x1xf32>
    %100 = arith.mulf %94, %94 : vector<4x1xf32>
    %101 = arith.subf %99, %100 : vector<4x1xf32>
    %cst_47 = arith.constant 0.000000e+00 : f32
    %102 = vector.broadcast %cst_47 : f32 to vector<4x1xf32>
    %103 = arith.maximumf %101, %102 : vector<4x1xf32>
    %104 = vector.broadcast %94 : vector<4x1xf32> to vector<4x128xf32>
    %105 = arith.subf %90, %104 : vector<4x128xf32>
    %cst_48 = arith.constant 9.99999974E-6 : f32
    %106 = vector.broadcast %cst_48 : f32 to vector<4x1xf32>
    %107 = arith.addf %103, %106 : vector<4x1xf32>
    %108 = math.rsqrt %107 : vector<4x1xf32>
    %109 = vector.broadcast %108 : vector<4x1xf32> to vector<4x128xf32>
    %110 = arith.mulf %105, %109 : vector<4x128xf32>
    %111 = arith.mulf %110, %40 : vector<4x128xf32>
    %112 = arith.addf %111, %43 : vector<4x128xf32>
    %113 = vector.extract_strided_slice %37 {offsets = [0, 384], sizes = [4, 128], strides = [1, 1]} : vector<4x512xf32> to vector<4x128xf32>
    %cst_49 = arith.constant dense<0.000000e+00> : vector<4xf32>
    %114 = vector.multi_reduction <add>, %113, %cst_49 [1] : vector<4x128xf32> to vector<4xf32>
    %115 = vector.shape_cast %114 : vector<4xf32> to vector<4x1xf32>
    %cst_50 = arith.constant 1.280000e+02 : f32
    %116 = vector.broadcast %cst_50 : f32 to vector<4x1xf32>
    %117 = arith.divf %115, %116 : vector<4x1xf32>
    %118 = arith.mulf %113, %113 : vector<4x128xf32>
    %cst_51 = arith.constant dense<0.000000e+00> : vector<4xf32>
    %119 = vector.multi_reduction <add>, %118, %cst_51 [1] : vector<4x128xf32> to vector<4xf32>
    %120 = vector.shape_cast %119 : vector<4xf32> to vector<4x1xf32>
    %cst_52 = arith.constant 1.280000e+02 : f32
    %121 = vector.broadcast %cst_52 : f32 to vector<4x1xf32>
    %122 = arith.divf %120, %121 : vector<4x1xf32>
    %123 = arith.mulf %117, %117 : vector<4x1xf32>
    %124 = arith.subf %122, %123 : vector<4x1xf32>
    %cst_53 = arith.constant 0.000000e+00 : f32
    %125 = vector.broadcast %cst_53 : f32 to vector<4x1xf32>
    %126 = arith.maximumf %124, %125 : vector<4x1xf32>
    %127 = vector.broadcast %117 : vector<4x1xf32> to vector<4x128xf32>
    %128 = arith.subf %113, %127 : vector<4x128xf32>
    %cst_54 = arith.constant 9.99999974E-6 : f32
    %129 = vector.broadcast %cst_54 : f32 to vector<4x1xf32>
    %130 = arith.addf %126, %129 : vector<4x1xf32>
    %131 = math.rsqrt %130 : vector<4x1xf32>
    %132 = vector.broadcast %131 : vector<4x1xf32> to vector<4x128xf32>
    %133 = arith.mulf %128, %132 : vector<4x128xf32>
    %134 = arith.mulf %133, %40 : vector<4x128xf32>
    %135 = arith.addf %134, %43 : vector<4x128xf32>
    %136 = tpu.concatenate %66, %89, %112, %135 in 1 : vector<4x128xf32>, vector<4x128xf32>, vector<4x128xf32>, vector<4x128xf32> -> vector<4x512xf32>
    %c0_55 = arith.constant 0 : index
    %c0_56 = arith.constant 0 : index
    %c0_57 = arith.constant 0 : index
    %137 = vector.load %arg13[%c0_55, %c0_56, %c0_57] : memref<1x4x512xf32, #tpu.memory_space<vmem>>, vector<1x4x512xf32>
    %138 = vector.shape_cast %137 : vector<1x4x512xf32> to vector<4x512xf32>
    %139 = vector.shape_cast %136 : vector<4x512xf32> to vector<1x4x512xf32>
    tpu.vector_store %arg13[%c0_55, %c0_56, %c0_57], %139 {strides = array<i32>} : memref<1x4x512xf32, #tpu.memory_space<vmem>>, vector<1x4x512xf32>,
    return
  }
  func.func @transform_0(%arg0: i32, %arg1: i32) -> (i32, i32, i32, i32) {
    %c0_i32 = arith.constant 0 : i32
    %c0_i32_0 = arith.constant 0 : i32
    %c0_i32_1 = arith.constant 0 : i32
    return %arg0, %arg1, %c0_i32, %c0_i32_0 : i32, i32, i32, i32
  }
  func.func @transform_1(%arg0: i32, %arg1: i32) -> (i32, i32) {
    %c0_i32 = arith.constant 0 : i32
    %c0_i32_0 = arith.constant 0 : i32
    %c0_i32_1 = arith.constant 0 : i32
    return %c0_i32, %c0_i32_0 : i32, i32
  }
  func.func @transform_2(%arg0: i32, %arg1: i32) -> (i32, i32) {
    %c0_i32 = arith.constant 0 : i32
    %c0_i32_0 = arith.constant 0 : i32
    %c0_i32_1 = arith.constant 0 : i32
    return %c0_i32, %c0_i32_0 : i32, i32
  }
  func.func @transform_3(%arg0: i32, %arg1: i32) -> (i32, i32) {
    %c0_i32 = arith.constant 0 : i32
    %c0_i32_0 = arith.constant 0 : i32
    %c0_i32_1 = arith.constant 0 : i32
    return %c0_i32, %c0_i32_0 : i32, i32
  }
  func.func @transform_4(%arg0: i32, %arg1: i32) -> (i32, i32) {
    %c0_i32 = arith.constant 0 : i32
    %c0_i32_0 = arith.constant 0 : i32
    %c0_i32_1 = arith.constant 0 : i32
    return %c0_i32, %c0_i32_0 : i32, i32
  }
  func.func @transform_5(%arg0: i32, %arg1: i32) -> (i32, i32) {
    %c0_i32 = arith.constant 0 : i32
    %c0_i32_0 = arith.constant 0 : i32
    %c0_i32_1 = arith.constant 0 : i32
    return %c0_i32, %c0_i32_0 : i32, i32
  }
  func.func @transform_6(%arg0: i32, %arg1: i32) -> (i32, i32) {
    %c0_i32 = arith.constant 0 : i32
    %c0_i32_0 = arith.constant 0 : i32
    %c0_i32_1 = arith.constant 0 : i32
    return %c0_i32, %c0_i32_0 : i32, i32
  }
  func.func @transform_7(%arg0: i32, %arg1: i32) -> (i32, i32) {
    %c0_i32 = arith.constant 0 : i32
    %c0_i32_0 = arith.constant 0 : i32
    %c0_i32_1 = arith.constant 0 : i32
    return %c0_i32, %c0_i32_0 : i32, i32
  }
  func.func @transform_8(%arg0: i32, %arg1: i32) -> (i32, i32) {
    %c0_i32 = arith.constant 0 : i32
    %c0_i32_0 = arith.constant 0 : i32
    %c0_i32_1 = arith.constant 0 : i32
    return %c0_i32, %c0_i32_0 : i32, i32
  }
  func.func @transform_9(%arg0: i32, %arg1: i32) -> (i32, i32) {
    %c0_i32 = arith.constant 0 : i32
    %c0_i32_0 = arith.constant 0 : i32
    %c0_i32_1 = arith.constant 0 : i32
    return %c0_i32, %c0_i32_0 : i32, i32
  }
  func.func @transform_10(%arg0: i32, %arg1: i32) -> (i32, i32) {
    %c0_i32 = arith.constant 0 : i32
    %c0_i32_0 = arith.constant 0 : i32
    %c0_i32_1 = arith.constant 0 : i32
    return %c0_i32, %c0_i32_0 : i32, i32
  }
  func.func @transform_11(%arg0: i32, %arg1: i32) -> (i32, i32, i32) {
    %c0_i32 = arith.constant 0 : i32
    %c0_i32_0 = arith.constant 0 : i32
    return %arg0, %c0_i32, %arg1 : i32, i32, i32
  }
}

</mosaic_0001>

<bundles_post_ra>
// kernel: tpu_custom_call.1
= control target key start
LH: loop header
LB: loop body
LE: loop exit
PB: predicated region body
PF: predicated region fallthrough
CT: control target
= control target key end

     0   :  { %s3025_s0 = inlined_call_operand.hbm [shape: f32[2,2,4,2048], index: 0, kind: input, shape index: {}]   ;;  %s3026_s1 = inlined_call_operand.vmem [shape: f32[16,4], index: 1, kind: input, shape index: {}]   ;;  %s3027_s2 = inlined_call_operand.vmem [shape: f32[16,1], index: 2, kind: input, shape index: {}]   ;;  %s3028_s3 = inlined_call_operand.vmem [shape: f32[32,16], index: 3, kind: input, shape index: {}]   ;;  %s3029_s4 = inlined_call_operand.vmem [shape: f32[32,1], index: 4, kind: input, shape index: {}]   ;;  %s3030_s5 = inlined_call_operand.vmem [shape: f32[16,32], index: 5, kind: input, shape index: {}]   ;;  %s3031_s6 = inlined_call_operand.vmem [shape: f32[16,1], index: 6, kind: input, shape index: {}]   ;;  %s3032_s7 = inlined_call_operand.vmem [shape: f32[4,16], index: 7, kind: input, shape index: {}]   ;;  %s3033_s8 = inlined_call_operand.vmem [shape: f32[4,1], index: 8, kind: input, shape index: {}]   ;;  %s3034_s9 = inlined_call_operand.vmem [shape: f32[1,128], index: 9, kind: input, shape index: {}]   ;;  %s3035_s10 = inlined_call_operand.vmem [shape: f32[1,128], index: 10, kind: input, shape index: {}]   ;;  %s3036_s11 = inlined_call_operand.hbm [shape: f32[2,4,1024], index: 11, kind: output, shape index: {}]  }
   0x1   :  { %3044 = sst [smem:[#allocation13_spill]] %s3034_s9 }
   0x2   :  { %3045 = sst [smem:[#allocation14_spill]] %s3035_s10 }
   0x3   :  { %3046 = sst [smem:[#allocation15_spill]] %s3036_s11 }
   0x4   :  { %16 = vsyncpa [#allocation3], 0 }
   0x5   :  { %18 = vsyncpa [#allocation3 + $0x1], 0 }
   0x6   :  { %19 = vsyncpa [#allocation4], 0 }
   0x7   :  { %21 = vsyncpa [#allocation4 + $0x1], 0  ;;  %s2554_s17 = smov 0   ;;  %s2556_s18 = smov 0  }
   0x8   :  { %s2558_s19 = smov 0   ;;  %s2560_s20 = smov 0  }
   0x9   :  { %s2562_s21 = smov 0   ;;  %s2564_s22 = smov 0  }
   0xa   :  { %s2566_s23 = smov 0   ;;  %s2568_s24 = smov 0  }
   0xb LB: > { %3047 = sst [smem:[#allocation8_spill]] %s2460_s17  ;;  %s2149_s25 = sadd.s32 4294967295, %s2488_s24   ;;  %s2488_s24 = sphi %s2568_s24, %s27_s24   ;;  %s2484_s23 = sphi %s2566_s23, %s3076_s23   ;;  %s2480_s22 = sphi %s2564_s22, %s3075_s22   ;;  %s2476_s21 = sphi %s2562_s21, %s3074_s21   ;;  %s2472_s20 = sphi %s2560_s20, %s3073_s20   ;;  %s2468_s19 = sphi %s2558_s19, %s3072_s19   ;;  %s2464_s18 = sphi %s2556_s18, %s3071_s18   ;;  %s2460_s17 = sphi %s2554_s17, %s3070_s17  }
   0xc   : > { %3048 = sst [smem:[#allocation9_spill]] %s2476_s21  ;;  %s2150_s26 = sadd.s32 4294967294, %s2488_s24  }
   0xd   : > { %s36_s27 = sadd.s32 1, %s2480_s22  ;;  %s39_s28 = sadd.s32 1, %s2484_s23 }
   0xe   : > { %p37_p0 = scmp.ge.s32.totalorder %s36_s27, 2  ;;  %s48_s29 = sadd.s32 1, %s2468_s19 }
   0xf   : > { %p55_p1 = scmp.ne.s32.totalorder %s2468_s19, %s2464_s18  ;;  %p56_p2 = scmp.eq.s32.totalorder %s2488_s24, 0 }
  0x10   : > { %s3078_s27 = smov (%p37_p0, %s36_s27), 0  ;;  %s3080_s28 = smov (!%p37_p0, %s39_s28), %s2484_s23 }
  0x11   : > { %3049 = sst [smem:[#allocation10_spill]] %s3078_s27  ;;  %s44_s30 = ssub.s32 %s2480_s22, %s3078_s27 }
  0x12   : > { %p2607_p3 = por %p56_p2, %p55_p1  ;;  %p41_p4 = scmp.ge.s32.totalorder %s3080_s28, 2 }
  0x13   : > { %p61_p5 = scmp.ne.s32.totalorder %s2464_s18, %s2460_s17  ;;  %p62_p6 = scmp.eq.s32.totalorder %s2149_s25, 0 }
  0x14   : > { %p297_p7 = scmp.eq.s32.totalorder %s2149_s25, 3  ;;  %s3082_s28 = smov (%p41_p4, %s3080_s28), 0 }
  0x15   : > { %3051 = sst [smem:[#allocation11_spill]] %s3082_s28  ;;  %p2615_p8 = por %p62_p6, %p61_p5 }
  0x16   : > { %p2619_p9 = por %p297_p7, %p55_p1  ;;  %s43_s15 = ssub.s32 %s2484_s23, %s3082_s28 }
  0x17   : > { %p303_p10 = scmp.eq.s32.totalorder %s2150_s26, 3  ;;  %s45_s16 = sor.u32 %s44_s30, %s43_s15 }
  0x18   : > { %s3053_s14 = scalar_select %p2619_p9, 1, 0 }
  0x19   : > { %p46_p11 = scmp.eq.s32.totalorder %s45_s16, 0  ;;  %p2625_p12 = por %p303_p10, %p61_p5 }
  0x1a   : > { %3054 = sst [smem:[#allocation12_spill]] %s3053_s14  ;;  %p2274_p13 = scmp.lt.s32.totalorder %s2488_s24, 4 }
  0x1b   : > { %s3055_s25 = scalar_select %p2625_p12, 1, 0 }
  0x1c   : > { %s353_s27 = sand.u32 1, %s2468_s19   ;;  %s2154_s10 = sshll.u32 %s2480_s22, 4 }
  0x1d   : > { %s2632_s17 = scalar_select %p46_p11, %s2468_s19, %s48_s29  }
  0x1e   : > { %s2153_s11 = sshll.u32 %s353_s27, 6  ;;  %s2155_s9 = sshll.u32 %s2484_s23, 5 }
  0x1f   : > { %s357_s21 = scalar_lea.vmem [#allocation2], %s2153_s11  ;;  %s363_s28 = sadd.s32 %s2155_s9, %s2154_s10 }
  0x20   : > { %s367_s14 = sshll.u32 %s357_s21, 4  ;;  %s2156_s26 = sshll.u32 %s363_s28, 6  ;;  %s2636_s14 = int_to_ptr.vmem [resolvable:$true] %s367_s14 }
  0x21   : > { %p2640_p0 = pnand %p2274_p13, %p2607_p3  ;;  %s2647_s29 = scalar_lea.hbm %s3025_s0, %s2156_s26 }
  0x22   : > { %s354_s9 = scalar_lea.sflag [#allocation3], %s353_s27  ;;  %s2360_s10 = scalar_lea.hbm %s2647_s29, 1024 }
  0x23   : > { %p2361_p4 = scmp.ne.s32.totalorder %s2647_s29, %s2360_s10  ;;  %p2362_p3 = pneg %p2640_p0 }
  0x24   : > { %s2365_s28 = scalar_lea.hbm %s3025_s0, 4096  ;;  %p2366_p7 = scmp.lt.u32.totalorder %s2647_s29, %s3025_s0 }
  0x25   : > { %p2363_p5 = pnand %p2362_p3, %p2361_p4  ;;  %p2367_p10 = scmp.lt.u32.totalorder %s2365_s28, %s2360_s10 }
  0x26   : > { %p2369_p13 = scmp.lt.u32.totalorder %s2360_s10, %s2647_s29 }
  0x27   : > { %p2364_p6 = pneg %p2363_p5  ;;  %p2368_p11 = por %p2367_p10, %p2366_p7 }
  0x29   : > { %p2370_p1 = por %p2369_p13, %p2368_p11 }
  0x2b   : > { %p2371_p2 = pnand %p2370_p1, %p2364_p6 }
  0x2d   : > { %2374 = shalt.err (!%p2371_p2)
}
  0x2e   : > { %s2375_s27 = scalar_lea.vmem %s2636_s14, 1024  ;;  %s2490_s15 = smov [#allocation2]  }
  0x2f   : > { %p2376_p4 = scmp.ne.s32.totalorder %s2636_s14, %s2375_s27  ;;  %s2380_s16 = sshll.u32 %s2490_s15, 4  ;;  %s2381_s16 = int_to_ptr.vmem [resolvable:$false] %s2380_s16 }
  0x30   : > { %s2382_s11 = scalar_lea.vmem %s2381_s16, 2048  ;;  %p2383_p9 = scmp.lt.s32.totalorder %s2636_s14, %s2381_s16 }
  0x31   : > { %p2378_p5 = pnand %p2376_p4, %p2362_p3  ;;  %p2384_p7 = scmp.lt.s32.totalorder %s2382_s11, %s2375_s27 }
  0x33   : > { %p2379_p12 = pneg %p2378_p5  ;;  %p2385_p10 = por %p2384_p7, %p2383_p9 }
  0x35   : > { %p2386_p11 = pnand %p2385_p10, %p2379_p12 }
  0x37   : > { %2389 = shalt.err (!%p2386_p11)
}
  0x38   : > { %2269 = dma.hbm_to_vmem [thread:$0]  (!%p2640_p0), %s2647_s29, 1024, %s2636_s14, %s354_s9  }
  0x39   : > { %p3057_p1 = scmp.lt.s32.totalorder %s2488_s24, 5  ;;  %p3058_p2 = scmp.ge.s32.totalorder %s2488_s24, 1 }
  0x3b   : > { %p373_p3 = pnand %p3058_p2, %p3057_p1 }
  0x3c   : > { %s2681_s10 = sand.u32 (!%p373_p3), 1, %s2464_s18  }
  0x3d   : > { %376 = sbr.rel (%p373_p3) target bundleno = 1215 (0x4bf), region = 64  ;;  %s2158_s21 = sshll.u32 (!%p373_p3), %s2681_s10, 6 }
  0x3e   : > { %s379_s28 = scalar_lea.sflag (!%p373_p3), [#allocation3], %s2681_s10  ;;  %s2685_s12 = scalar_lea.vmem (!%p373_p3), [#allocation2], %s2158_s21 }
  0x44   : > { %2451 = dma.done.wait (%p2615_p8), %s379_s28, 1024  }
  0x45   : > { %2453 = vsyncadd (%p2615_p8), %s379_s28, 4294966272  ;;  %v2491_v0 = vmov 0.0   ;;  %v2492_v1 = vmov 0   ;;  %v422_v2 = vld [vmem:[%s2685_s12] sm:$0xff]  ;;  %vm467_vm0 = vcmask 1043456   ;;  %v423_v3 = vld [vmem:[%s2685_s12 + $0x8] sm:$0xff] }
  0x46   : > { %564 = vmatprep.mubr.f32.mxu0 %v2491_v0  ;;  %641 = vmatprep.mubr.f32.mxu1 %v2491_v0  ;;  %v452_v4 = vcombine.high %v422_v2, %v422_v2  ;;  %v453_v5 = vcombine.high %v423_v3, %v423_v3  ;;  %v424_v6 = vld [vmem:[%s2685_s12 + $0x10] sm:$0xff]  ;;  %v425_v7 = vld [vmem:[%s2685_s12 + $0x18] sm:$0xff]  ;;  %v430_v8 = vld [vmem:[%s3026_s1] sm:$0xff]  ;;  %vm460_vm1 = vcmask 31744   ;;  %vm1176_vm2 = vcmask 130048   ;;  %s3059_s21 = sld [smem:[#allocation9_spill]] }
  0x47   : > { %2342 = vset.pattern.permute.xlu0 %v2492_v1  ;;  %2343 = vset.pattern.permute.xlu1 %v2492_v1  ;;  %v454_v9 = vcombine.high %v424_v6, %v424_v6  ;;  %v455_v10 = vcombine.high %v425_v7, %v425_v7  ;;  %v426_v11 = vld [vmem:[%s2685_s12 + $0x20] sm:$0xff]  ;;  %v427_v12 = vld [vmem:[%s2685_s12 + $0x28] sm:$0xff]  ;;  %v428_v16 = vld [vmem:[%s2685_s12 + $0x30] sm:$0xff]  ;;  %vm1623_vm3 = vcmask 261120   ;;  %s3060_s13 = sld [smem:[#allocation13_spill]]  ;;  %s3061_s29 = sld [smem:[#allocation14_spill]] }
  0x48   : > { %2160 = vmatprep.subr.msk.mxu0 %vm467_vm0, %v452_v4  ;;  %2164 = vmatprep.subr.msk.mxu1 %vm467_vm0, %v453_v5  ;;  %v431_v13 = vld [vmem:[%s3026_s1 + $0x8] sm:$0xff]  ;;  %v456_v14 = vcombine.high %v426_v11, %v426_v11  ;;  %v457_v15 = vcombine.high %v427_v12, %v427_v12  ;;  %v429_v17 = vld [vmem:[%s2685_s12 + $0x38] sm:$0xff]  ;;  %v432_v18 = vld [vmem:[%s3027_s2] sm:$0xff]  ;;  %v458_v19 = vcombine.high %v428_v16, %v428_v16  ;;  %s2217_s9 = sshll.u32 %s2472_s20, 2  ;;  %s2159_s27 = sshll.u32 %s2681_s10, 4 }
  0x49   : > { %2161 = vmatpush1.msk.msra.mxu0 %vm467_vm0, %v422_v2  ;;  %2165 = vmatpush1.msk.msra.mxu1 %vm467_vm0, %v423_v3  ;;  %v459_v20 = vcombine.high %v429_v17, %v429_v17  ;;  %v433_v21 = vld [vmem:[%s3027_s2 + $0x8] sm:$0xff]  ;;  %v1154_v22 = vld [vmem:[%s3029_s4 + $0x10] sm:$0xff]  ;;  %v1611_v23 = vld [vmem:[%s3031_s6] sm:$0xff]  ;;  %s3062_s16 = sld [smem:[#allocation12_spill]]  ;;  %s420_s20 = scalar_lea.vmem [#allocation5], %s2159_s27 }
  0x4a   : > { %2162 = vmatmul.mubr.msk.f32.vlgmr.msra.gmra.mrb[0].mxu0 %vm460_vm1, %v430_v8  ;;  %2166 = vmatmul.mubr.msk.f32.vlgmr.msra.gmra.mrb[0].mxu1 %vm460_vm1, %v430_v8  ;;  %v1793_v24 = vld [vmem:[%s3033_s8] sm:$0xf]  ;;  %v1153_v26 = vld [vmem:[%s3029_s4 + $0x8] sm:$0xff]  ;;  %v1155_v27 = vld [vmem:[%s3029_s4 + $0x18] sm:$0xff]  ;;  %s2046_s30 = scalar_lea.sflag [#allocation4], %s2681_s10 }
  0x4b   : > { %570 = vmatprep.mubr.f32.mxu0 %v2491_v0  ;;  %647 = vmatprep.mubr.f32.mxu1 %v2491_v0  ;;  %v1152_v25 = vld [vmem:[%s3029_s4] sm:$0xff]  ;;  %v1612_v28 = vld [vmem:[%s3031_s6 + $0x8] sm:$0xff] }
  0x4c   : > { %2168 = vmatprep.subr.msk.mxu0 %vm467_vm0, %v454_v9  ;;  %2172 = vmatprep.subr.msk.mxu1 %vm467_vm0, %v455_v10  ;;  %s2218_s26 = sshll.u32 %s3059_s21, 3  ;;  %s2062_s21 = sshll.u32 %s420_s20, 4  ;;  %s2973_s21 = int_to_ptr.vmem [resolvable:$true] %s2062_s21 }
  0x4d   : > { %2169 = vmatpush1.msk.msra.mxu0 %vm467_vm0, %v424_v6  ;;  %2173 = vmatpush1.msk.msra.mxu1 %vm467_vm0, %v425_v7  ;;  %s2058_s15 = sadd.s32 %s2218_s26, %s2217_s9  ;;  %s2493_s9 = smov [#allocation5]  }
  0x4e   : > { %2163 = vmatmul.mubr.msk.f32.gmra.mrb[2].mxu0 %vm460_vm1, %v431_v13  ;;  %2167 = vmatmul.mubr.msk.f32.gmra.mrb[2].mxu1 %vm460_vm1, %v431_v13  ;;  %s2219_s11 = sshll.u32 %s2058_s15, 6  ;;  %s2394_s26 = sshll.u32 %s2493_s9, 4  ;;  %s2395_s26 = int_to_ptr.vmem [resolvable:$false] %s2394_s26 }
  0x4f   : > { %718 = vmatprep.mubr.f32.mxu0 %v2491_v0  ;;  %795 = vmatprep.mubr.f32.mxu1 %v2491_v0  ;;  %p3064_p9 = scmp.ne.s32.totalorder %s3062_s16, 0  ;;  %s2396_s27 = scalar_lea.vmem %s2395_s26, 512 }
  0x50   : > { %2176 = vmatprep.subr.msk.mxu0 %vm467_vm0, %v456_v14  ;;  %2180 = vmatprep.subr.msk.mxu1 %vm467_vm0, %v457_v15  ;;  %p2397_p6 = scmp.lt.s32.totalorder %s2973_s21, %s2395_s26 }
  0x51   : > { %436 = vperm.xlu0 %2342, %v432_v18   ;;  %1158 = vperm.xlu1 %2343, %v1152_v25  }
  0x52   : > { %2170 = vmatmul.mubr.msk.f32.vlgmr.msra.gmra.mrb[4].mxu0 %vm460_vm1, %v430_v8  ;;  %2174 = vmatmul.mubr.msk.f32.vlgmr.msra.gmra.mrb[4].mxu1 %vm460_vm1, %v430_v8 }
  0x53   : > { %724 = vmatprep.mubr.f32.mxu0 %v2491_v0  ;;  %801 = vmatprep.mubr.f32.mxu1 %v2491_v0 }
  0x54   : > { %2177 = vmatpush1.msk.msra.mxu0 %vm467_vm0, %v426_v11  ;;  %2181 = vmatpush1.msk.msra.mxu1 %vm467_vm0, %v427_v12 }
  0x55   : > { %2184 = vmatprep.subr.msk.mxu0 %vm467_vm0, %v458_v19  ;;  %2188 = vmatprep.subr.msk.mxu1 %vm467_vm0, %v459_v20 }
  0x56   : > { %2171 = vmatmul.mubr.msk.f32.gmra.mrb[6].mxu0 %vm460_vm1, %v431_v13  ;;  %2175 = vmatmul.mubr.msk.f32.gmra.mrb[6].mxu1 %vm460_vm1, %v431_v13 }
  0x57   : > { %872 = vmatprep.mubr.f32.mxu0 %v2491_v0  ;;  %949 = vmatprep.mubr.f32.mxu1 %v2491_v0 }
  0x58   : > { %441 = vperm.xlu0 %2342, %v433_v21   ;;  %1163 = vperm.xlu1 %2343, %v1153_v26  }
  0x5a   : > { %2178 = vmatmul.mubr.msk.f32.vlgmr.msra.gmra.mrb[8].mxu0 %vm460_vm1, %v430_v8  ;;  %2182 = vmatmul.mubr.msk.f32.vlgmr.msra.gmra.mrb[8].mxu1 %vm460_vm1, %v430_v8 }
  0x5b   : > { %878 = vmatprep.mubr.f32.mxu0 %v2491_v0  ;;  %955 = vmatprep.mubr.f32.mxu1 %v2491_v0 }
  0x5c   : > { %2185 = vmatpush1.msk.msra.mxu0 %vm467_vm0, %v428_v16  ;;  %2189 = vmatpush1.msk.msra.mxu1 %vm467_vm0, %v429_v17 }
  0x5d   : > { %1168 = vperm.xlu0 %2342, %v1154_v22   ;;  %1173 = vperm.xlu1 %2343, %v1155_v27  }
  0x5e   : > { %2179 = vmatmul.mubr.msk.f32.gmra.mrb[10].mxu0 %vm460_vm1, %v431_v13  ;;  %2183 = vmatmul.mubr.msk.f32.gmra.mrb[10].mxu1 %vm460_vm1, %v431_v13 }
  0x5f   : > { %1026 = vmatprep.mubr.f32.mxu0 %v2491_v0  ;;  %1103 = vmatprep.mubr.f32.mxu1 %v2491_v0 }
  0x61   : > { %1615 = vperm.xlu0 %2342, %v1611_v23   ;;  %1620 = vperm.xlu1 %2343, %v1612_v28  }
  0x62   : > { %2186 = vmatmul.mubr.msk.f32.vlgmr.msra.gmra.mrb[12].mxu0 %vm460_vm1, %v430_v8  ;;  %2190 = vmatmul.mubr.msk.f32.vlgmr.msra.gmra.mrb[12].mxu1 %vm460_vm1, %v430_v8 }
  0x63   : > { %1032 = vmatprep.mubr.f32.mxu0 %v2491_v0  ;;  %1109 = vmatprep.mubr.f32.mxu1 %v2491_v0 }
  0x65   : > { %1796 = vperm.xlu0 %2342, %v1793_v24  }
  0x66   : > { %2187 = vmatmul.mubr.msk.f32.gmra.mrb[14].mxu0 %vm460_vm1, %v431_v13  ;;  %2191 = vmatmul.mubr.msk.f32.gmra.mrb[14].mxu1 %vm460_vm1, %v431_v13 }
  0x67   : > { %1253 = vmatprep.mubr.f32.mxu0 %v2491_v0  ;;  %1342 = vmatprep.mubr.f32.mxu1 %v2491_v0 }
  0xd0   : > { %v437_v37 = vpop.permute.xlu0 %436 }
  0xd7   : > { %v2788_v46 = vpop.permute.xlu0 %441 }
 0x11d   : > { %v566_v29 = vpop.f32.mrb[0].mxu0  ;;  %v643_v30 = vpop.f32.mrb[0].mxu1 }
 0x11e   : > { %v568_v31 = vpop.f32.mrb[1].mxu0  ;;  %v645_v32 = vpop.f32.mrb[1].mxu1  ;;  %v567_v47 = vadd.f32 %v566_v29, %v437_v37  ;;  %v644_v50 = vadd.f32 %v643_v30, %v437_v37 }
 0x11f   : > { %v569_v51 = vadd.f32 %v568_v31, %v437_v37  ;;  %v646_v56 = vadd.f32 %v645_v32, %v437_v37 }
 0x121   : > { %v572_v33 = vpop.f32.mrb[2].mxu0  ;;  %v649_v34 = vpop.f32.mrb[2].mxu1 }
 0x122   : > { %v574_v35 = vpop.f32.mrb[3].mxu0  ;;  %v651_v36 = vpop.f32.mrb[3].mxu1  ;;  %v573_v57 = vadd.f32 %v572_v33, %v2788_v46  ;;  %v650_v60 = vadd.f32 %v649_v34, %v2788_v46 }
 0x123   : > { %v575_v61 = vadd.f32 %v574_v35, %v2788_v46  ;;  %v652_v1 = vadd.f32 %v651_v36, %v2788_v46 }
 0x125   : > { %v720_v38 = vpop.f32.mrb[4].mxu0  ;;  %v797_v39 = vpop.f32.mrb[4].mxu1 }
 0x126   : > { %v722_v40 = vpop.f32.mrb[5].mxu0  ;;  %v799_v41 = vpop.f32.mrb[5].mxu1  ;;  %v2794_v2 = vadd.f32 %v720_v38, %v437_v37  ;;  %v798_v7 = vadd.f32 %v797_v39, %v437_v37 }
 0x127   : > { %v723_v8 = vadd.f32 %v722_v40, %v437_v37  ;;  %v800_v13 = vadd.f32 %v799_v41, %v437_v37 }
 0x129   : > { %v726_v42 = vpop.f32.mrb[6].mxu0  ;;  %v2782_v43 = vpop.f32.mrb[6].mxu1 }
 0x12a   : > { %v2784_v44 = vpop.f32.mrb[7].mxu0  ;;  %v2786_v45 = vpop.f32.mrb[7].mxu1  ;;  %v727_v14 = vadd.f32 %v726_v42, %v2788_v46 }
 0x12d   : > { %v874_v48 = vpop.f32.mrb[8].mxu0  ;;  %v951_v49 = vpop.f32.mrb[8].mxu1 }
 0x12e   : > { %v875_v52 = vadd.f32 %v874_v48, %v437_v37  ;;  %v952_v53 = vadd.f32 %v951_v49, %v437_v37  ;;  %v876_v54 = vpop.f32.mrb[9].mxu0  ;;  %v953_v55 = vpop.f32.mrb[9].mxu1 }
 0x12f   : > { %v877_v58 = vadd.f32 %v876_v54, %v437_v37  ;;  %v954_v59 = vadd.f32 %v953_v55, %v437_v37 }
 0x130   : > { %v1116_v62 = vmax.f32 %v567_v47, %v875_v52  ;;  %v1118_v63 = vmax.f32 %v644_v50, %v952_v53  ;;  %v804_v52 = vadd.f32 %v2782_v43, %v2788_v46  ;;  %v729_v53 = vadd.f32 %v2784_v44, %v2788_v46  ;;  %v1148_v44 = vld [vmem:[%s3028_s3] sm:$0xff] }
 0x131   : > { %v1117_v3 = vmax.f32 %v569_v51, %v877_v58  ;;  %v1119_v4 = vmax.f32 %v646_v56, %v954_v59  ;;  %v880_v5 = vpop.f32.mrb[10].mxu0  ;;  %v957_v6 = vpop.f32.mrb[10].mxu1 }
 0x132   : > { %v881_v9 = vadd.f32 %v880_v5, %v2788_v46  ;;  %v958_v10 = vadd.f32 %v957_v6, %v2788_v46  ;;  %v882_v11 = vpop.f32.mrb[11].mxu0  ;;  %v959_v12 = vpop.f32.mrb[11].mxu1  ;;  %v1132_v17 = vmax.f32 %v1116_v62, 0.0  ;;  %v1134_v18 = vmax.f32 %v1118_v63, 0.0 }
 0x133   : > { %v883_v15 = vadd.f32 %v882_v11, %v2788_v46  ;;  %v960_v16 = vadd.f32 %v959_v12, %v2788_v46  ;;  %v1133_v21 = vmax.f32 %v1117_v3, 0.0  ;;  %v1135_v22 = vmax.f32 %v1119_v4, 0.0  ;;  %v1150_v11 = vld [vmem:[%s3028_s3 + $0x10] sm:$0xff]  ;;  %v1151_v12 = vld [vmem:[%s3028_s3 + $0x18] sm:$0xff] }
 0x134   : > { %v1124_v19 = vmax.f32 %v573_v57, %v881_v9  ;;  %v1126_v20 = vmax.f32 %v650_v60, %v958_v10  ;;  %v806_v57 = vadd.f32 %v2786_v45, %v2788_v46 }
 0x135   : > { %v1125_v23 = vmax.f32 %v575_v61, %v883_v15  ;;  %v1127_v24 = vmax.f32 %v652_v1, %v960_v16  ;;  %v1028_v25 = vpop.f32.mrb[12].mxu0  ;;  %v1105_v26 = vpop.f32.mrb[12].mxu1 }
 0x136   : > { %v1140_v27 = vmax.f32 %v1124_v19, 0.0  ;;  %v1142_v28 = vmax.f32 %v1126_v20, 0.0  ;;  %v1029_v29 = vadd.f32 %v1028_v25, %v437_v37  ;;  %v1106_v30 = vadd.f32 %v1105_v26, %v437_v37  ;;  %v1030_v31 = vpop.f32.mrb[13].mxu0  ;;  %v1107_v32 = vpop.f32.mrb[13].mxu1 }
 0x137   : > { %v1141_v33 = vmax.f32 %v1125_v23, 0.0  ;;  %v1143_v34 = vmax.f32 %v1127_v24, 0.0  ;;  %v1031_v35 = vadd.f32 %v1030_v31, %v437_v37  ;;  %v1108_v36 = vadd.f32 %v1107_v32, %v437_v37 }
 0x138   : > { %v2224_v38 = vpack.c.bf16 %v1140_v27, %v1132_v17  ;;  %v2228_v39 = vpack.c.bf16 %v1142_v28, %v1134_v18  ;;  %v1120_v40 = vmax.f32 %v2794_v2, %v1029_v29  ;;  %v1122_v41 = vmax.f32 %v798_v7, %v1106_v30  ;;  %v2856_v27 = vpop.permute.xlu0 %1168 }
 0x139   : > { %v1121_v42 = vmax.f32 %v723_v8, %v1031_v35  ;;  %v1123_v47 = vmax.f32 %v800_v13, %v1108_v36  ;;  %v1034_v48 = vpop.f32.mrb[14].mxu0  ;;  %v1111_v49 = vpop.f32.mrb[14].mxu1  ;;  %v2222_v50 = vpack.c.bf16 %v1141_v33, %v1133_v21  ;;  %v2226_v51 = vpack.c.bf16 %v1143_v34, %v1135_v22  ;;  %v1149_v8 = vld [vmem:[%s3028_s3 + $0x8] sm:$0xff] }
 0x13a   : > { %v1035_v54 = vadd.f32 %v1034_v48, %v2788_v46  ;;  %v1112_v37 = vadd.f32 %v1111_v49, %v2788_v46  ;;  %v1036_v55 = vpop.f32.mrb[15].mxu0  ;;  %v1113_v56 = vpop.f32.mrb[15].mxu1  ;;  %v1136_v63 = vmax.f32 %v1120_v40, 0.0  ;;  %v1138_v1 = vmax.f32 %v1122_v41, 0.0 }
 0x13b   : > { %v1037_v58 = vadd.f32 %v1036_v55, %v2788_v46  ;;  %v1114_v59 = vadd.f32 %v1113_v56, %v2788_v46  ;;  %2223 = vmatprep.subr.bf16.mxu0 %v2222_v50  ;;  %2227 = vmatprep.subr.bf16.mxu1 %v2226_v51  ;;  %v1137_v3 = vmax.f32 %v1121_v42, 0.0  ;;  %v1139_v4 = vmax.f32 %v1123_v47, 0.0  ;;  %v1159_v13 = vpop.permute.xlu1 %1158 }
 0x13c   : > { %v1128_v60 = vmax.f32 %v727_v14, %v1035_v54  ;;  %v1130_v43 = vmax.f32 %v804_v52, %v1112_v37  ;;  %2225 = vmatpush1.bf16.msra.mxu0 %v2224_v38  ;;  %2229 = vmatpush1.bf16.msra.mxu1 %v2228_v39 }
 0x13d   : > { %v1129_v61 = vmax.f32 %v729_v53, %v1037_v58  ;;  %v1131_v62 = vmax.f32 %v806_v57, %v1114_v59 }
 0x13e   : > { %v1144_v45 = vmax.f32 %v1128_v60, 0.0  ;;  %v1146_v2 = vmax.f32 %v1130_v43, 0.0 }
 0x13f   : > { %v1145_v46 = vmax.f32 %v1129_v61, 0.0  ;;  %v1147_v5 = vmax.f32 %v1131_v62, 0.0  ;;  %2192 = vmatmul.mubr.msk.f32.vlgmr.msra.gmra.mrb[16].mxu0 %vm1176_vm2, %v1148_v44  ;;  %2196 = vmatmul.mubr.msk.f32.vlgmr.msra.gmra.mrb[16].mxu1 %vm1176_vm2, %v1148_v44  ;;  %v1164_v22 = vpop.permute.xlu1 %1163 }
 0x140   : > { %v2232_v6 = vpack.c.bf16 %v1144_v45, %v1136_v63  ;;  %v2236_v7 = vpack.c.bf16 %v1146_v2, %v1138_v1  ;;  %1259 = vmatprep.mubr.f32.mxu0 %v2491_v0  ;;  %1348 = vmatprep.mubr.f32.mxu1 %v2491_v0 }
 0x141   : > { %v2230_v9 = vpack.c.bf16 %v1145_v46, %v1137_v3  ;;  %v2234_v10 = vpack.c.bf16 %v1147_v5, %v1139_v4 }
 0x143   : > { %2193 = vmatmul.mubr.msk.f32.gmra.mrb[18].mxu0 %vm1176_vm2, %v1149_v8  ;;  %2197 = vmatmul.mubr.msk.f32.gmra.mrb[18].mxu1 %vm1176_vm2, %v1149_v8  ;;  %v2878_v53 = vpop.permute.xlu1 %1173 }
 0x144   : > { %2231 = vmatprep.subr.bf16.mxu0 %v2230_v9  ;;  %2235 = vmatprep.subr.bf16.mxu1 %v2234_v10 }
 0x145   : > { %2233 = vmatpush1.bf16.msra.mxu0 %v2232_v6  ;;  %2237 = vmatpush1.bf16.msra.mxu1 %v2236_v7 }
 0x146   : > { %1265 = vmatprep.mubr.f32.mxu0 %v2491_v0  ;;  %1354 = vmatprep.mubr.f32.mxu1 %v2491_v0 }
 0x147   : > { %2194 = vmatmul.mubr.msk.f32.gmra.mrb[20].mxu0 %vm1176_vm2, %v1150_v11  ;;  %2198 = vmatmul.mubr.msk.f32.gmra.mrb[20].mxu1 %vm1176_vm2, %v1150_v11 }
 0x148   : > { %1271 = vmatprep.mubr.f32.mxu0 %v2491_v0  ;;  %1360 = vmatprep.mubr.f32.mxu1 %v2491_v0 }
 0x14b   : > { %2195 = vmatmul.mubr.msk.f32.gmra.mrb[22].mxu0 %vm1176_vm2, %v1151_v12  ;;  %2199 = vmatmul.mubr.msk.f32.gmra.mrb[22].mxu1 %vm1176_vm2, %v1151_v12 }
 0x14c   : > { %1431 = vmatprep.mubr.f32.mxu0 %v2491_v0  ;;  %1520 = vmatprep.mubr.f32.mxu1 %v2491_v0 }
 0x14f   : > { %2200 = vmatmul.mubr.msk.f32.vlgmr.msra.gmra.mrb[24].mxu0 %vm1176_vm2, %v1148_v44  ;;  %2204 = vmatmul.mubr.msk.f32.vlgmr.msra.gmra.mrb[24].mxu1 %vm1176_vm2, %v1148_v44 }
 0x150   : > { %1437 = vmatprep.mubr.f32.mxu0 %v2491_v0  ;;  %1526 = vmatprep.mubr.f32.mxu1 %v2491_v0 }
 0x153   : > { %2201 = vmatmul.mubr.msk.f32.gmra.mrb[26].mxu0 %vm1176_vm2, %v1149_v8  ;;  %2205 = vmatmul.mubr.msk.f32.gmra.mrb[26].mxu1 %vm1176_vm2, %v1149_v8 }
 0x154   : > { %1443 = vmatprep.mubr.f32.mxu0 %v2491_v0  ;;  %1532 = vmatprep.mubr.f32.mxu1 %v2491_v0 }
 0x157   : > { %2202 = vmatmul.mubr.msk.f32.gmra.mrb[28].mxu0 %vm1176_vm2, %v1150_v11  ;;  %2206 = vmatmul.mubr.msk.f32.gmra.mrb[28].mxu1 %vm1176_vm2, %v1150_v11 }
 0x158   : > { %1449 = vmatprep.mubr.f32.mxu0 %v2491_v0  ;;  %1538 = vmatprep.mubr.f32.mxu1 %v2491_v0 }
 0x15b   : > { %2203 = vmatmul.mubr.msk.f32.gmra.mrb[30].mxu0 %vm1176_vm2, %v1151_v12  ;;  %2207 = vmatmul.mubr.msk.f32.gmra.mrb[30].mxu1 %vm1176_vm2, %v1151_v12 }
 0x15c   : > { %1694 = vmatprep.mubr.f32.mxu0 %v2491_v0  ;;  %1771 = vmatprep.mubr.f32.mxu1 %v2491_v0 }
 0x212   : > { %v1255_v14 = vpop.f32.mrb[16].mxu0  ;;  %v1344_v15 = vpop.f32.mrb[16].mxu1 }
 0x213   : > { %v1257_v16 = vpop.f32.mrb[17].mxu0  ;;  %v1346_v17 = vpop.f32.mrb[17].mxu1  ;;  %v1256_v28 = vadd.f32 %v1255_v14, %v1159_v13  ;;  %v1345_v29 = vadd.f32 %v1344_v15, %v1159_v13 }
 0x214   : > { %v1258_v30 = vadd.f32 %v1257_v16, %v1159_v13  ;;  %v1347_v31 = vadd.f32 %v1346_v17, %v1159_v13 }
 0x215   : > { %v1545_v49 = vmax.f32 %v1256_v28, 0.0  ;;  %v1547_v50 = vmax.f32 %v1345_v29, 0.0 }
 0x216   : > { %v1261_v18 = vpop.f32.mrb[18].mxu0  ;;  %v1350_v19 = vpop.f32.mrb[18].mxu1  ;;  %v1546_v51 = vmax.f32 %v1258_v30, 0.0  ;;  %v1548_v52 = vmax.f32 %v1347_v31, 0.0 }
 0x217   : > { %v1263_v20 = vpop.f32.mrb[19].mxu0  ;;  %v1352_v21 = vpop.f32.mrb[19].mxu1  ;;  %v2858_v32 = vadd.f32 %v1261_v18, %v1164_v22  ;;  %v2860_v33 = vadd.f32 %v1350_v19, %v1164_v22 }
 0x218   : > { %v2862_v34 = vadd.f32 %v1263_v20, %v1164_v22  ;;  %v2864_v35 = vadd.f32 %v1352_v21, %v1164_v22 }
 0x219   : > { %v1553_v54 = vmax.f32 %v2858_v32, 0.0  ;;  %v1555_v37 = vmax.f32 %v2860_v33, 0.0 }
 0x21a   : > { %v1267_v23 = vpop.f32.mrb[20].mxu0  ;;  %v1356_v24 = vpop.f32.mrb[20].mxu1  ;;  %v1554_v55 = vmax.f32 %v2862_v34, 0.0  ;;  %v1556_v56 = vmax.f32 %v2864_v35, 0.0 }
 0x21b   : > { %v1269_v25 = vpop.f32.mrb[21].mxu0  ;;  %v1358_v26 = vpop.f32.mrb[21].mxu1  ;;  %v2867_v39 = vadd.f32 %v1267_v23, %v2856_v27  ;;  %v2870_v40 = vadd.f32 %v1356_v24, %v2856_v27 }
 0x21c   : > { %v2873_v47 = vadd.f32 %v1269_v25, %v2856_v27  ;;  %v2876_v48 = vadd.f32 %v1358_v26, %v2856_v27 }
 0x21d   : > { %v1561_v59 = vmax.f32 %v2867_v39, 0.0  ;;  %v1563_v60 = vmax.f32 %v2870_v40, 0.0 }
 0x21e   : > { %v1273_v36 = vpop.f32.mrb[22].mxu0  ;;  %v1362_v38 = vpop.f32.mrb[22].mxu1  ;;  %v1562_v63 = vmax.f32 %v2873_v47, 0.0  ;;  %v1564_v1 = vmax.f32 %v2876_v48, 0.0 }
 0x21f   : > { %v1275_v41 = vpop.f32.mrb[23].mxu0  ;;  %v1364_v42 = vpop.f32.mrb[23].mxu1  ;;  %v2889_v3 = vadd.f32 %v1273_v36, %v2878_v53  ;;  %v2892_v4 = vadd.f32 %v1362_v38, %v2878_v53 }
 0x220   : > { %v2895_v6 = vadd.f32 %v1275_v41, %v2878_v53  ;;  %v2898_v7 = vadd.f32 %v1364_v42, %v2878_v53 }
 0x221   : > { %v1569_v23 = vmax.f32 %v2889_v3, 0.0  ;;  %v1571_v24 = vmax.f32 %v2892_v4, 0.0 }
 0x222   : > { %v1433_v57 = vpop.f32.mrb[24].mxu0  ;;  %v1522_v58 = vpop.f32.mrb[24].mxu1 }
 0x223   : > { %v1434_v43 = vadd.f32 %v1433_v57, %v1159_v13  ;;  %v1523_v44 = vadd.f32 %v1522_v58, %v1159_v13  ;;  %v1435_v61 = vpop.f32.mrb[25].mxu0  ;;  %v1524_v62 = vpop.f32.mrb[25].mxu1 }
 0x224   : > { %v1436_v45 = vadd.f32 %v1435_v61, %v1159_v13  ;;  %v1525_v2 = vadd.f32 %v1524_v62, %v1159_v13 }
 0x225   : > { %v1549_v46 = vmax.f32 %v1434_v43, 0.0  ;;  %v1551_v5 = vmax.f32 %v1523_v44, 0.0 }
 0x226   : > { %v1550_v8 = vmax.f32 %v1436_v45, 0.0  ;;  %v1552_v9 = vmax.f32 %v1525_v2, 0.0  ;;  %v1439_v10 = vpop.f32.mrb[26].mxu0  ;;  %v1528_v11 = vpop.f32.mrb[26].mxu1 }
 0x227   : > { %v1577_v12 = vadd.f32 %v1549_v46, %v1545_v49  ;;  %v1579_v13 = vadd.f32 %v1551_v5, %v1547_v50  ;;  %v1440_v14 = vadd.f32 %v1439_v10, %v1164_v22  ;;  %v1529_v15 = vadd.f32 %v1528_v11, %v1164_v22  ;;  %v1441_v16 = vpop.f32.mrb[27].mxu0  ;;  %v1530_v17 = vpop.f32.mrb[27].mxu1 }
 0x228   : > { %v1578_v18 = vadd.f32 %v1550_v8, %v1546_v51  ;;  %v1580_v19 = vadd.f32 %v1552_v9, %v1548_v52  ;;  %v1442_v20 = vadd.f32 %v1441_v16, %v1164_v22  ;;  %v1531_v21 = vadd.f32 %v1530_v17, %v1164_v22 }
 0x229   : > { %v1557_v25 = vmax.f32 %v1440_v14, 0.0  ;;  %v1559_v26 = vmax.f32 %v1529_v15, 0.0  ;;  %v1593_v28 = vmul.f32 0.5, %v1577_v12  ;;  %v1595_v29 = vmul.f32 0.5, %v1579_v13 }
 0x22a   : > { %v1558_v30 = vmax.f32 %v1442_v20, 0.0  ;;  %v1560_v31 = vmax.f32 %v1531_v21, 0.0  ;;  %v1445_v32 = vpop.f32.mrb[28].mxu0  ;;  %v1534_v33 = vpop.f32.mrb[28].mxu1  ;;  %v1594_v46 = vmul.f32 0.5, %v1578_v18  ;;  %v1596_v5 = vmul.f32 0.5, %v1580_v19 }
 0x22b   : > { %v1581_v34 = vadd.f32 %v1557_v25, %v1553_v54  ;;  %v1583_v35 = vadd.f32 %v1559_v26, %v1555_v37  ;;  %v1446_v36 = vadd.f32 %v1445_v32, %v2856_v27  ;;  %v1535_v38 = vadd.f32 %v1534_v33, %v2856_v27  ;;  %v1447_v39 = vpop.f32.mrb[29].mxu0  ;;  %v1536_v22 = vpop.f32.mrb[29].mxu1 }
 0x22c   : > { %v1582_v40 = vadd.f32 %v1558_v30, %v1554_v55  ;;  %v1584_v41 = vadd.f32 %v1560_v31, %v1556_v56  ;;  %v1448_v42 = vadd.f32 %v1447_v39, %v2856_v27  ;;  %v1537_v47 = vadd.f32 %v1536_v22, %v2856_v27 }
 0x22d   : > { %v1597_v48 = vmul.f32 0.5, %v1581_v34  ;;  %v1599_v49 = vmul.f32 0.5, %v1583_v35  ;;  %v1565_v50 = vmax.f32 %v1446_v36, 0.0  ;;  %v1567_v51 = vmax.f32 %v1535_v38, 0.0  ;;  %v1616_v35 = vpop.permute.xlu0 %1615  ;;  %v1621_v36 = vpop.permute.xlu1 %1620 }
 0x22e   : > { %v1598_v52 = vmul.f32 0.5, %v1582_v40  ;;  %v1600_v57 = vmul.f32 0.5, %v1584_v41  ;;  %v1566_v54 = vmax.f32 %v1448_v42, 0.0  ;;  %v1568_v37 = vmax.f32 %v1537_v47, 0.0  ;;  %v1451_v58 = vpop.f32.mrb[30].mxu0  ;;  %v1540_v43 = vpop.f32.mrb[30].mxu1 }
 0x22f   : > { %v2240_v44 = vpack.c.bf16 %v1597_v48, %v1593_v28  ;;  %v2248_v61 = vpack.c.bf16 %v1599_v49, %v1595_v29  ;;  %v1585_v62 = vadd.f32 %v1565_v50, %v1561_v59  ;;  %v1587_v45 = vadd.f32 %v1567_v51, %v1563_v60  ;;  %v1453_v55 = vpop.f32.mrb[31].mxu0  ;;  %v1542_v56 = vpop.f32.mrb[31].mxu1 }
 0x230   : > { %v1586_v2 = vadd.f32 %v1566_v54, %v1562_v63  ;;  %v1588_v3 = vadd.f32 %v1568_v37, %v1564_v1  ;;  %v1452_v27 = vadd.f32 %v1451_v58, %v2878_v53  ;;  %v1541_v4 = vadd.f32 %v1540_v43, %v2878_v53 }
 0x231   : > { %v1454_v8 = vadd.f32 %v1453_v55, %v2878_v53  ;;  %v1543_v9 = vadd.f32 %v1542_v56, %v2878_v53  ;;  %v1570_v10 = vmax.f32 %v2895_v6, 0.0  ;;  %v1572_v11 = vmax.f32 %v2898_v7, 0.0 }
 0x232   : > { %v1573_v59 = vmax.f32 %v1452_v27, 0.0  ;;  %v1575_v60 = vmax.f32 %v1541_v4, 0.0  ;;  %v2238_v63 = vpack.c.bf16 %v1598_v52, %v1594_v46  ;;  %v2246_v1 = vpack.c.bf16 %v1600_v57, %v1596_v5 }
 0x233   : > { %v1574_v12 = vmax.f32 %v1454_v8, 0.0  ;;  %v1576_v13 = vmax.f32 %v1543_v9, 0.0  ;;  %v1601_v18 = vmul.f32 0.5, %v1585_v62  ;;  %v1603_v19 = vmul.f32 0.5, %v1587_v45 }
 0x234   : > { %v1589_v14 = vadd.f32 %v1573_v59, %v1569_v23  ;;  %v1591_v15 = vadd.f32 %v1575_v60, %v1571_v24  ;;  %2239 = vmatprep.subr.bf16.mxu0 %v2238_v63  ;;  %2247 = vmatprep.subr.bf16.mxu1 %v2246_v1  ;;  %v1602_v6 = vmul.f32 0.5, %v1586_v2  ;;  %v1604_v7 = vmul.f32 0.5, %v1588_v3  ;;  %v1609_v23 = vld [vmem:[%s3030_s5] sm:$0xff]  ;;  %v1610_v24 = vld [vmem:[%s3030_s5 + $0x8] sm:$0xff]  ;;  %v1797_v3 = vpop.permute.xlu0 %1796 }
 0x235   : > { %v1590_v16 = vadd.f32 %v1574_v12, %v1570_v10  ;;  %v1592_v17 = vadd.f32 %v1576_v13, %v1572_v11  ;;  %2241 = vmatpush1.bf16.msra.mxu0 %v2240_v44  ;;  %2249 = vmatpush1.bf16.msra.mxu1 %v2248_v61  ;;  %v1792_v2 = vld [vmem:[%s3032_s7] sm:$0xf] }
 0x236   : > { %v1605_v20 = vmul.f32 0.5, %v1589_v14  ;;  %v1607_v53 = vmul.f32 0.5, %v1591_v15 }
 0x237   : > { %v1606_v21 = vmul.f32 0.5, %v1590_v16  ;;  %v1608_v25 = vmul.f32 0.5, %v1592_v17 }
 0x238   : > { %v2244_v26 = vpack.c.bf16 %v1605_v20, %v1601_v18  ;;  %v2252_v28 = vpack.c.bf16 %v1607_v53, %v1603_v19 }
 0x239   : > { %v2242_v29 = vpack.c.bf16 %v1606_v21, %v1602_v6  ;;  %v2250_v30 = vpack.c.bf16 %v1608_v25, %v1604_v7 }
 0x23b   : > { %2243 = vmatprep.subr.bf16.mxu0 %v2242_v29  ;;  %2251 = vmatprep.subr.bf16.mxu1 %v2250_v30 }
 0x23c   : > { %2245 = vmatpush1.bf16.msra.mxu0 %v2244_v26  ;;  %2253 = vmatpush1.bf16.msra.mxu1 %v2252_v28 }
 0x23f   : > { %2208 = vmatmul.mubr.msk.f32.vlgmr.msra.gmra.mrb[32].mxu0 %vm1623_vm3, %v1609_v23  ;;  %2210 = vmatmul.mubr.msk.f32.vlgmr.msra.gmra.mrb[32].mxu1 %vm1623_vm3, %v1609_v23 }
 0x240   : > { %1700 = vmatprep.mubr.f32.mxu0 %v2491_v0  ;;  %1777 = vmatprep.mubr.f32.mxu1 %v2491_v0 }
 0x243   : > { %2209 = vmatmul.mubr.msk.f32.gmra.mrb[34].mxu0 %vm1623_vm3, %v1610_v24  ;;  %2211 = vmatmul.mubr.msk.f32.gmra.mrb[34].mxu1 %vm1623_vm3, %v1610_v24 }
 0x244   : > { %1866 = vmatprep.mubr.f32.mxu0 %v2491_v0  ;;  %1937 = vmatprep.mubr.f32.mxu1 %v2491_v0 }
 0x312   : > { %v1696_v31 = vpop.f32.mrb[32].mxu0  ;;  %v1773_v32 = vpop.f32.mrb[32].mxu1 }
 0x313   : > { %v1698_v33 = vpop.f32.mrb[33].mxu0  ;;  %v1775_v34 = vpop.f32.mrb[33].mxu1  ;;  %v1697_v38 = vadd.f32 %v1696_v31, %v1616_v35  ;;  %v1774_v39 = vadd.f32 %v1773_v32, %v1616_v35 }
 0x314   : > { %v1699_v22 = vadd.f32 %v1698_v33, %v1616_v35  ;;  %v1776_v40 = vadd.f32 %v1775_v34, %v1616_v35 }
 0x315   : > { %v1784_v57 = vmax.f32 %v1697_v38, 0.0  ;;  %v1786_v0 = vmax.f32 %v1774_v39, 0.0 }
 0x316   : > { %v1702_v41 = vpop.f32.mrb[34].mxu0  ;;  %v1779_v42 = vpop.f32.mrb[34].mxu1  ;;  %v1785_v58 = vmax.f32 %v1699_v22, 0.0  ;;  %v1787_v43 = vmax.f32 %v1776_v40, 0.0 }
 0x317   : > { %v1703_v47 = vadd.f32 %v1702_v41, %v1621_v36  ;;  %v1780_v48 = vadd.f32 %v1779_v42, %v1621_v36  ;;  %v1704_v49 = vpop.f32.mrb[35].mxu0  ;;  %v1781_v50 = vpop.f32.mrb[35].mxu1 }
 0x318   : > { %v1705_v51 = vadd.f32 %v1704_v49, %v1621_v36  ;;  %v1782_v52 = vadd.f32 %v1781_v50, %v1621_v36 }
 0x319   : > { %v1788_v54 = vmax.f32 %v1703_v47, 0.0  ;;  %v1790_v37 = vmax.f32 %v1780_v48, 0.0 }
 0x31a   : > { %v1789_v44 = vmax.f32 %v1705_v51, 0.0  ;;  %v1791_v61 = vmax.f32 %v1782_v52, 0.0 }
 0x31b   : > { %v2256_v62 = vpack.c.bf16 %v1788_v54, %v1784_v57  ;;  %v2260_v45 = vpack.c.bf16 %v1790_v37, %v1786_v0 }
 0x31c   : > { %v2254_v55 = vpack.c.bf16 %v1789_v44, %v1785_v58  ;;  %v2258_v56 = vpack.c.bf16 %v1791_v61, %v1787_v43 }
 0x31e   : > { %2255 = vmatprep.subr.bf16.mxu0 %v2254_v55  ;;  %2259 = vmatprep.subr.bf16.mxu1 %v2258_v56 }
 0x31f   : > { %2257 = vmatpush1.bf16.msra.mxu0 %v2256_v62  ;;  %2261 = vmatpush1.bf16.msra.mxu1 %v2260_v45  ;;  %v2214_v45 = vld [vmem:[%s3060_s13] ss:$0 sm:$0xff]  ;;  %s3063_s13 = sld [smem:[#allocation15_spill]] }
 0x322   : > { %2212 = vmatmul.mubr.msk.f32.vlgmr.msra.gmra.mrb[36].mxu0 %vm1176_vm2, %v1792_v2  ;;  %2213 = vmatmul.mubr.msk.f32.vlgmr.msra.gmra.mrb[36].mxu1 %vm1176_vm2, %v1792_v2 }
 0x325   : > { %s2971_s14 = scalar_lea.hbm %s3063_s13, %s2219_s11 }
 0x3f5   : > { %v1868_v27 = vpop.f32.mrb[36].mxu0  ;;  %v1939_v4 = vpop.f32.mrb[36].mxu1 }
 0x3f6   : > { %v1869_v46 = vadd.f32 %v1868_v27, %v1797_v3  ;;  %v1940_v5 = vadd.f32 %v1939_v4, %v1797_v3  ;;  %v1870_v8 = vpop.f32.mrb[37].mxu0  ;;  %v1941_v9 = vpop.f32.mrb[37].mxu1 }
 0x3f7   : > { %v1871_v10 = vadd.f32 %v1870_v8, %v1797_v3  ;;  %v1942_v11 = vadd.f32 %v1941_v9, %v1797_v3  ;;  %v2215_v3 = vld [vmem:[%s3061_s29] ss:$0 sm:$0xff]  ;;  %s2390_s29 = scalar_lea.vmem %s2973_s21, 256 }
 0x3f8   : > { %v2927_v59 = vmax.f32 %v1869_v46, 0.0  ;;  %v2929_v60 = vmax.f32 %v1940_v5, 0.0  ;;  %p2391_p8 = scmp.ne.s32.totalorder %s2973_s21, %s2390_s29  ;;  %p2398_p13 = scmp.lt.s32.totalorder %s2396_s27, %s2390_s29 }
 0x3f9   : > { %v2931_v12 = vmax.f32 %v1871_v10, 0.0  ;;  %v2933_v13 = vmax.f32 %v1942_v11, 0.0 }
 0x3fa   : > { %v1999_v63 = vsel %vm467_vm0, %v2929_v60, 0.0  ;;  %v1962_v1 = vsel %vm467_vm0, %v2927_v59, 0.0  ;;  %v1967_v16 = vmul.f32 %v2927_v59, %v2927_v59  ;;  %v2003_v20 = vmul.f32 %v2929_v60, %v2929_v60  ;;  %p2392_p12 = pnand %p2391_p8, %p3064_p9  ;;  %p2399_p4 = por %p2398_p13, %p2397_p6 }
 0x3fb   : > { %2000 = vadd.xlane.f32.xlu0 %v1999_v63  ;;  %1963 = vadd.xlane.f32.xlu1 %v1962_v1  ;;  %v1981_v14 = vsel %vm467_vm0, %v2931_v12, 0.0  ;;  %v2017_v15 = vsel %vm467_vm0, %v2933_v13, 0.0  ;;  %v1985_v17 = vmul.f32 %v2931_v12, %v2931_v12  ;;  %v2021_v53 = vmul.f32 %v2933_v13, %v2933_v13 }
 0x3fc   : > { %v1968_v18 = vsel %vm467_vm0, %v1967_v16, 0.0  ;;  %v2004_v6 = vsel %vm467_vm0, %v2003_v20, 0.0  ;;  %p2393_p0 = pneg %p2392_p12 }
 0x3fd   : > { %v1986_v19 = vsel %vm467_vm0, %v1985_v17, 0.0  ;;  %v2022_v7 = vsel %vm467_vm0, %v2021_v53, 0.0 }
 0x3fe   : > { %p2400_p5 = pnand %p2399_p4, %p2393_p0 }
 0x3ff   : > { %1982 = vadd.xlane.f32.xlu0 %v1981_v14  ;;  %2018 = vadd.xlane.f32.xlu1 %v2017_v15 }
 0x403   : > { %1969 = vadd.xlane.f32.xlu0 %v1968_v18  ;;  %1987 = vadd.xlane.f32.xlu1 %v1986_v19 }
 0x407   : > { %2005 = vadd.xlane.f32.xlu0 %v2004_v6  ;;  %2023 = vadd.xlane.f32.xlu1 %v2022_v7 }
 0x488   : > { %v2001_v21 = vpop.xlane.xlu0 %2000  ;;  %v1964_v25 = vpop.xlane.xlu1 %1963 }
 0x489   : > { %v1966_v29 = vmul.f32 0.0078125, %v1964_v25  ;;  %v2002_v23 = vmul.f32 0.0078125, %v2001_v21 }
 0x48b   : > { %v1972_v33 = vmul.f32 %v1966_v29, %v1966_v29  ;;  %v2008_v22 = vmul.f32 %v2002_v23, %v2002_v23  ;;  %v1975_v44 = vsub.f32 %v2927_v59, %v1966_v29  ;;  %v2011_v27 = vsub.f32 %v2929_v60, %v2002_v23 }
 0x48c   : > { %v1983_v26 = vpop.xlane.xlu0 %1982  ;;  %v2019_v28 = vpop.xlane.xlu1 %2018 }
 0x48d   : > { %v1984_v30 = vmul.f32 0.0078125, %v1983_v26  ;;  %v2020_v24 = vmul.f32 0.0078125, %v2019_v28 }
 0x48f   : > { %v1990_v34 = vmul.f32 %v1984_v30, %v1984_v30  ;;  %v2026_v40 = vmul.f32 %v2020_v24, %v2020_v24  ;;  %v1993_v62 = vsub.f32 %v2931_v12, %v1984_v30  ;;  %v2029_v5 = vsub.f32 %v2933_v13, %v2020_v24 }
 0x490   : > { %v1970_v31 = vpop.xlane.xlu0 %1969  ;;  %v1988_v32 = vpop.xlane.xlu1 %1987 }
 0x491   : > { %v1971_v35 = vmul.f32 0.0078125, %v1970_v31  ;;  %v1989_v36 = vmul.f32 0.0078125, %v1988_v32 }
 0x493   : > { %v1973_v38 = vsub.f32 %v1971_v35, %v1972_v33  ;;  %v1991_v39 = vsub.f32 %v1989_v36, %v1990_v34 }
 0x494   : > { %v2006_v41 = vpop.xlane.xlu0 %2005  ;;  %v2024_v42 = vpop.xlane.xlu1 %2023 }
 0x495   : > { %v1974_v47 = vmax.f32 %v1973_v38, 0.0  ;;  %v1992_v48 = vmax.f32 %v1991_v39, 0.0  ;;  %v2007_v49 = vmul.f32 0.0078125, %v2006_v41  ;;  %v2025_v50 = vmul.f32 0.0078125, %v2024_v42 }
 0x497   : > { %v1976_v51 = vadd.f32 1e-05, %v1974_v47  ;;  %v1994_v52 = vadd.f32 1e-05, %v1992_v48  ;;  %v2009_v57 = vsub.f32 %v2007_v49, %v2008_v22  ;;  %v2027_v0 = vsub.f32 %v2025_v50, %v2026_v40 }
 0x499   : > { %2352 = vrsqrt.f32 %v1976_v51  ;;  %v2010_v54 = vmax.f32 %v2009_v57, 0.0  ;;  %v2028_v37 = vmax.f32 %v2027_v0, 0.0 }
 0x49a   : > { %2354 = vrsqrt.f32 %v1994_v52 }
 0x49b   : > { %v2012_v58 = vadd.f32 1e-05, %v2010_v54  ;;  %v2030_v43 = vadd.f32 1e-05, %v2028_v37 }
 0x49d   : > { %2356 = vrsqrt.f32 %v2012_v58 }
 0x49e   : > { %2358 = vrsqrt.f32 %v2030_v43 }
 0x4a3   : > { %v2353_v61 = vpop.eup %2352 }
 0x4a4   : > { %v2355_v55 = vpop.eup %2354  ;;  %v1978_v56 = vmul.f32 %v2353_v61, %v1975_v44 }
 0x4a5   : > { %v1996_v2 = vmul.f32 %v2355_v55, %v1993_v62 }
 0x4a6   : > { %v1979_v4 = vmul.f32 %v2214_v45, %v1978_v56 }
 0x4a7   : > { %v2357_v46 = vpop.eup %2356  ;;  %v1997_v8 = vmul.f32 %v2214_v45, %v1996_v2 }
 0x4a8   : > { %v2359_v9 = vpop.eup %2358  ;;  %v2014_v10 = vmul.f32 %v2357_v46, %v2011_v27  ;;  %v1980_v11 = vadd.f32 %v2215_v3, %v1979_v4 }
 0x4a9   : > { %v2032_v59 = vmul.f32 %v2359_v9, %v2029_v5  ;;  %v1998_v12 = vadd.f32 %v2215_v3, %v1997_v8 }
 0x4aa   : > { %v2015_v63 = vmul.f32 %v2214_v45, %v2014_v10 }
 0x4ab   : > { %v2033_v1 = vmul.f32 %v2214_v45, %v2032_v59  ;;  %v2039_v14 = vcombine.low %v1980_v11, %v1998_v12 }
 0x4ac   : > { %v2016_v60 = vadd.f32 %v2215_v3, %v2015_v63 }
 0x4ad   : > { %v2034_v15 = vadd.f32 %v2215_v3, %v2033_v1  ;;  %2043 = vst [vmem:[%s420_s20] sm:$0xff] %v2039_v14 }
 0x4af   : > { %v2040_v13 = vcombine.low %v2016_v60, %v2034_v15 }
 0x4b1   : > { %2044 = vst [vmem:[%s420_s20 + $0x8] sm:$0xff] %v2040_v13 }
 0x4b2   : > { %2403 = shalt.err (!%p2400_p5)
}
 0x4b3   : > { %s2404_s10 = scalar_lea.hbm %s2971_s14, 256  ;;  %s2408_s20 = scalar_lea.hbm %s3063_s13, 1024 }
 0x4b4   : > { %p2405_p7 = scmp.ne.s32.totalorder %s2971_s14, %s2404_s10  ;;  %p2409_p1 = scmp.lt.u32.totalorder %s2971_s14, %s3063_s13 }
 0x4b5   : > { %p2410_p2 = scmp.lt.u32.totalorder %s2408_s20, %s2404_s10  ;;  %p2412_p8 = scmp.lt.u32.totalorder %s2404_s10, %s2971_s14 }
 0x4b6   : > { %p2406_p10 = pnand %p2405_p7, %p3064_p9 }
 0x4b7   : > { %p2411_p3 = por %p2410_p2, %p2409_p1 }
 0x4b8   : > { %p2407_p11 = pneg %p2406_p10 }
 0x4b9   : > { %p2413_p12 = por %p2412_p8, %p2411_p3 }
 0x4bb   : > { %p2414_p0 = pnand %p2413_p12, %p2407_p11 }
 0x4bd   : > { %2417 = shalt.err (!%p2414_p0)
}
 0x4be   : > { %2264 = dma.vmem_to_hbm [thread:$0]  (%p3064_p9), %s2973_s21, 256, %s2971_s14, %s2046_s30  }
 0x4bf PF: > { %s3065_s29 = sld [smem:[#allocation8_spill]]  ;;  %p2275_p6 = scmp.ge.s32.totalorder %s2488_s24, 2 }
 0x4c0   : > { %p3066_p13 = scmp.ne.s32.totalorder %s3055_s25, 0 }
 0x4c2   : > { %p2271_p4 = pnand %p2275_p6, %p3066_p13 }
 0x4c5   : > { %s2074_s9 = sand.u32 1, %s3065_s29  }
 0x4c6   : > { %s2075_s26 = scalar_lea.sflag [#allocation4], %s2074_s9 }
 0x4c7   : > { %2455 = dma.done.wait (!%p2271_p4), %s2075_s26, 256  }
 0x4c8   : > { %2457 = vsyncadd (!%p2271_p4), %s2075_s26, 4294967040  ;;  %s27_s24 = sadd.s32 1, %s2488_s24   ;;  %s3067_s16 = smov %s2632_s17 }
 0x4c9   : > { %p24_p5 = scmp.ge.s32.totalorder %s27_s24, 6   ;;  %s3068_s14 = sld [smem:[#allocation10_spill]] }
 0x4ca   : > { %s3069_s30 = sld [smem:[#allocation11_spill]]  ;;  %s3070_s17 = smov %s2464_s18 }
 0x4cb   : > { %s3071_s18 = smov %s2468_s19  ;;  %s3072_s19 = smov %s3067_s16 }
 0x4cc   : > { %s3073_s20 = smov %s2480_s22  ;;  %s3074_s21 = smov %s2484_s23 }
 0x4cd   :  { %26 = sbr.rel (!%p24_p5) target bundleno = 11 (0xb), region = 109 }
 0x4cf   : > { %s3075_s22 = smov %s3068_s14 }
 0x4d0   : > { %s3076_s23 = smov %s3069_s30 }
 0x4d4   :  { %2080 = vsyncpa [#allocation3], 1 }
 0x4d5   :  { %2082 = vsyncpa [#allocation3 + $0x1], 1 }
 0x4d6   :  { %2083 = vsyncpa [#allocation4], 1 }
 0x4d7   :  { %2085 = vsyncpa [#allocation4 + $0x1], 1 }

</bundles_post_ra>
